<compile_context>
chip_gen: v5e
topology: v5e:2x2
jax: 0.10.0
libtpu: 0.0.40
codegen_flags: <defaults>
</compile_context>

<pallas_src>
import functools

import jax
import jax.numpy as jnp
from jax.experimental import pallas as pl
from jax.experimental.pallas import tpu as pltpu


HIDDEN = 512
LANES = 128


def _round_up(x, m):
    return ((x + m - 1) // m) * m


def critic_kernel(x_ref, w1_ref, b1_ref, w2_ref, b2_ref, o_ref):
    # fc1: MXU matmul (bf16 or f32 operands) with f32 accumulation,
    # bias + ReLU on the VPU.
    h = jnp.dot(x_ref[...], w1_ref[...], preferred_element_type=jnp.float32)
    h = jnp.maximum(h + b1_ref[...], 0.0)                   # (TB, 512)

    # fc2 (N=1): keep it off the MXU.  VPU multiply by the (1, 512) weight row,
    # fold 512 lanes -> 128 with vreg-aligned static-slice adds (pure VALU),
    # then one 128-lane XLU reduction per row.
    hw = h * w2_ref[...]                                    # (TB, 512)
    p = hw[:, 0:LANES]
    for c in range(1, HIDDEN // LANES):
        p = p + hw[:, c * LANES:(c + 1) * LANES]            # (TB, 128)
    v = jnp.sum(p, axis=-1, keepdims=True)                  # (TB, 1)

    o_ref[...] = (v + b2_ref[0]).astype(o_ref.dtype)        # b2 scalar from SMEM


@functools.partial(jax.jit, static_argnames=("block_b", "mm_dtype"))
def critic_forward(state, w1, b1, w2, b2, *, block_b=1024, mm_dtype=jnp.bfloat16):
    """state: (B, state_dim) -> value: (B, 1) float32."""
    B, D = state.shape
    assert w1.shape == (D, HIDDEN)
    assert w2.shape == (HIDDEN, 1)

    # ---- Tile selection: fat, balanced batch tiles; no host-side padding. ----
    num_tiles = pl.cdiv(B, block_b)
    if B >= 512:                      # enough rows to split across v7x's 2 TCs
        num_tiles = max(num_tiles, 2)
    if num_tiles > 1 and num_tiles % 2:
        num_tiles += 1                # even step count -> both TCs busy
    TB = _round_up(pl.cdiv(B, num_tiles), 8)
    grid_b = pl.cdiv(B, TB)

    # ---- Operand dtypes: bf16 matmul operands, f32 everywhere else. ----
    x = state.astype(mm_dtype)
    w1_mm = w1.astype(mm_dtype)
    b1_row = b1.reshape(1, HIDDEN).astype(jnp.float32)       # (1, 512) bias row
    w2_row = w2.reshape(1, HIDDEN).astype(jnp.float32)       # (512,1) -> (1,512)
    b2_vec = b2.reshape(1).astype(jnp.float32)                # scalar via SMEM

    itemsize = jnp.dtype(mm_dtype).itemsize
    # Explicit scoped-VMEM budget: double-buffered x/out blocks + resident
    # weights (default double-buffered) + generous room for the (TB,512) f32
    # intermediates.  v5e default (16 MiB) can otherwise be tripped at big TB.
    vmem_needed = (2 * TB * D * itemsize                 # x blocks
                   + 2 * TB * 4                          # out blocks
                   + 2 * (D * HIDDEN * itemsize + 2 * HIDDEN * 4)  # w1,b1,w2
                   + 4 * TB * HIDDEN * 4)                # h / epilogue temps
    vmem_limit = int(min(48 * 1024 * 1024,
                         max(16 * 1024 * 1024, int(vmem_needed * 1.5))))

    cost = pl.CostEstimate(
        flops=2 * B * D * HIDDEN + 3 * B * HIDDEN + 2 * B,
        transcendentals=0,
        bytes_accessed=(B * D * itemsize + D * HIDDEN * itemsize
                        + 2 * HIDDEN * 4 + 4 + B * 4),
    )

    out = pl.pallas_call(
        critic_kernel,
        out_shape=jax.ShapeDtypeStruct((B, 1), jnp.float32),
        grid=(grid_b,),
        in_specs=[
            pl.BlockSpec((TB, D), lambda i: (i, 0)),            # x: tiled on batch
            pl.BlockSpec((D, HIDDEN), lambda i: (0, 0)),        # w1: resident
            pl.BlockSpec((1, HIDDEN), lambda i: (0, 0)),        # b1: resident
            pl.BlockSpec((1, HIDDEN), lambda i: (0, 0)),        # w2 row: resident
            pl.BlockSpec(memory_space=pltpu.MemorySpace.SMEM),  # b2 scalar
        ],
        out_specs=pl.BlockSpec((TB, 1), lambda i: (i, 0)),
        compiler_params=pltpu.CompilerParams(
            # Independent batch tiles; on v7x the grid steps shard across TCs.
            dimension_semantics=(pltpu.PARALLEL,),
            vmem_limit_bytes=vmem_limit,
        ),
        cost_estimate=cost,
    )(x, w1_mm, b1_row, w2_row, b2_vec)
    return out


def init_critic_params(key, state_dim):
    """Deterministic init mimicking PyTorch's default Linear init
    (uniform in +/- 1/sqrt(fan_in))."""
    k1, k2, k3, k4 = jax.random.split(key, 4)
    bound1 = 1.0 / jnp.sqrt(float(state_dim))
    bound2 = 1.0 / jnp.sqrt(float(HIDDEN))
    w1 = jax.random.uniform(k1, (state_dim, HIDDEN), jnp.float32, -bound1, bound1)
    b1 = jax.random.uniform(k2, (HIDDEN,), jnp.float32, -bound1, bound1)
    w2 = jax.random.uniform(k3, (HIDDEN, 1), jnp.float32, -bound2, bound2)
    b2 = jax.random.uniform(k4, (1,), jnp.float32, -bound2, bound2)
    return w1, b1, w2, b2


if __name__ == "__main__":
    key = jax.random.PRNGKey(0)
    k_params, k_s1, k_s2 = jax.random.split(key, 3)

    state_dim = 32
    w1, b1, w2, b2 = init_critic_params(k_params, state_dim)

    def ref_f32(s):  # exact module semantics
        return jnp.maximum(s @ w1 + b1, 0.0) @ w2 + b2

    def ref_bf16(s):  # mirrors the kernel's bf16-operand / f32-accum matmul
        h = jnp.dot(s.astype(jnp.bfloat16), w1.astype(jnp.bfloat16),
                    preferred_element_type=jnp.float32)
        return jnp.maximum(h + b1, 0.0) @ w2 + b2

    ok = True

    # Small batch (single grid step; same toy size as the original module use).
    s1 = jax.random.normal(k_s1, (8, state_dim), jnp.float32)
    v1 = jax.block_until_ready(critic_forward(s1, w1, b1, w2, b2))
    ok &= (v1.shape == (8, 1)) and bool(
        jnp.allclose(v1, ref_bf16(s1), atol=2e-3, rtol=2e-3))

    # Batch that exercises the 2-step grid and the ragged (unpadded) last block:
    # B=520 -> 2 tiles of 264 rows, last tile 256 real + 8 out-of-bounds rows.
    s2 = jax.random.normal(k_s2, (520, state_dim), jnp.float32)
    v2 = jax.block_until_ready(critic_forward(s2, w1, b1, w2, b2))
    ok &= (v2.shape == (520, 1)) and bool(
        jnp.allclose(v2, ref_bf16(s2), atol=2e-3, rtol=2e-3))

    # Full-precision path (exact PyTorch-module numerics).
    v3 = jax.block_until_ready(
        critic_forward(s2, w1, b1, w2, b2, mm_dtype=jnp.float32))
    ok &= bool(jnp.allclose(v3, ref_f32(s2), atol=1e-4, rtol=1e-4))

    assert ok
    print("KERNEL_OK")
</pallas_src>

<mosaic_0001>
module attributes {stable_mosaic.version = 11 : i64} {
  func.func @critic_kernel(%arg0: i32, %arg1: memref<8x32xbf16, #tpu.memory_space<vmem>>, %arg2: memref<32x512xbf16, #tpu.memory_space<vmem>>, %arg3: memref<1x512xf32, #tpu.memory_space<vmem>>, %arg4: memref<1x512xf32, #tpu.memory_space<vmem>>, %arg5: memref<1xf32, #tpu.memory_space<smem>>, %arg6: memref<8x1xf32, #tpu.memory_space<vmem>>) attributes {dimension_semantics = [#tpu.dimension_semantics<parallel>], iteration_bounds = array<i64: 1>, scalar_prefetch = 0 : i64, scratch_operands = 0 : i64, tpu.core_type = #tpu.core_type<tc>, window_params = [{transform_indices = @transform_0, window_bounds = array<i64: 8, 32>}, {pipeline_mode = #tpu.pipeline_mode<synchronous>, transform_indices = @transform_1, window_bounds = array<i64: 32, 512>}, {pipeline_mode = #tpu.pipeline_mode<synchronous>, transform_indices = @transform_2, window_bounds = array<i64: 1, 512>}, {pipeline_mode = #tpu.pipeline_mode<synchronous>, transform_indices = @transform_3, window_bounds = array<i64: 1, 512>}, {transform_indices = @transform_4, window_bounds = array<i64: 1>}, {transform_indices = @transform_5, window_bounds = array<i64: 8, 1>}]} {
    %c0 = arith.constant 0 : index
    %c0_0 = arith.constant 0 : index
    %0 = vector.load %arg1[%c0, %c0_0] : memref<8x32xbf16, #tpu.memory_space<vmem>>, vector<8x32xbf16>
    %c0_1 = arith.constant 0 : index
    %c0_2 = arith.constant 0 : index
    %1 = vector.load %arg2[%c0_1, %c0_2] : memref<32x512xbf16, #tpu.memory_space<vmem>>, vector<32x512xbf16>
    %cst = arith.constant dense<0.000000e+00> : vector<8x512xf32>
    %2 = tpu.matmul %0, %1, %cst {dimension_numbers = #tpu.dot_dimension_numbers<[1], [0], [0], [1], [0, 0, 1, 1], [], []>} : vector<8x32xbf16>, vector<32x512xbf16>, vector<8x512xf32> -> vector<8x512xf32>
    %c0_3 = arith.constant 0 : index
    %c0_4 = arith.constant 0 : index
    %3 = vector.load %arg3[%c0_3, %c0_4] : memref<1x512xf32, #tpu.memory_space<vmem>>, vector<1x512xf32>
    %4 = vector.broadcast %3 : vector<1x512xf32> to vector<8x512xf32>
    %5 = arith.addf %2, %4 : vector<8x512xf32>
    %cst_5 = arith.constant 0.000000e+00 : f32
    %6 = vector.broadcast %cst_5 : f32 to vector<8x512xf32>
    %7 = arith.maximumf %5, %6 : vector<8x512xf32>
    %c0_6 = arith.constant 0 : index
    %c0_7 = arith.constant 0 : index
    %8 = vector.load %arg4[%c0_6, %c0_7] : memref<1x512xf32, #tpu.memory_space<vmem>>, vector<1x512xf32>
    %9 = vector.broadcast %8 : vector<1x512xf32> to vector<8x512xf32>
    %10 = arith.mulf %7, %9 : vector<8x512xf32>
    %11 = vector.extract_strided_slice %10 {offsets = [0, 0], sizes = [8, 128], strides = [1, 1]} : vector<8x512xf32> to vector<8x128xf32>
    %12 = vector.extract_strided_slice %10 {offsets = [0, 128], sizes = [8, 128], strides = [1, 1]} : vector<8x512xf32> to vector<8x128xf32>
    %13 = arith.addf %11, %12 : vector<8x128xf32>
    %14 = vector.extract_strided_slice %10 {offsets = [0, 256], sizes = [8, 128], strides = [1, 1]} : vector<8x512xf32> to vector<8x128xf32>
    %15 = arith.addf %13, %14 : vector<8x128xf32>
    %16 = vector.extract_strided_slice %10 {offsets = [0, 384], sizes = [8, 128], strides = [1, 1]} : vector<8x512xf32> to vector<8x128xf32>
    %17 = arith.addf %15, %16 : vector<8x128xf32>
    %cst_8 = arith.constant dense<0.000000e+00> : vector<8xf32>
    %18 = vector.multi_reduction <add>, %17, %cst_8 [1] : vector<8x128xf32> to vector<8xf32>
    %19 = vector.shape_cast %18 : vector<8xf32> to vector<8x1xf32>
    %c0_9 = arith.constant 0 : index
    %20 = memref.load %arg5[%c0_9] : memref<1xf32, #tpu.memory_space<smem>>
    %21 = vector.broadcast %20 : f32 to vector<8x1xf32>
    %22 = arith.addf %19, %21 : vector<8x1xf32>
    %c0_10 = arith.constant 0 : index
    %c0_11 = arith.constant 0 : index
    %23 = vector.load %arg6[%c0_10, %c0_11] : memref<8x1xf32, #tpu.memory_space<vmem>>, vector<8x1xf32>
    tpu.vector_store %arg6[%c0_10, %c0_11], %22 {strides = array<i32>} : memref<8x1xf32, #tpu.memory_space<vmem>>, vector<8x1xf32>,
    return
  }
  func.func @transform_0(%arg0: i32) -> (i32, i32) {
    %c0_i32 = arith.constant 0 : i32
    %c0_i32_0 = arith.constant 0 : i32
    return %arg0, %c0_i32 : i32, i32
  }
  func.func @transform_1(%arg0: i32) -> (i32, i32) {
    %c0_i32 = arith.constant 0 : i32
    %c0_i32_0 = arith.constant 0 : i32
    %c0_i32_1 = arith.constant 0 : i32
    return %c0_i32, %c0_i32_0 : i32, i32
  }
  func.func @transform_2(%arg0: i32) -> (i32, i32) {
    %c0_i32 = arith.constant 0 : i32
    %c0_i32_0 = arith.constant 0 : i32
    %c0_i32_1 = arith.constant 0 : i32
    return %c0_i32, %c0_i32_0 : i32, i32
  }
  func.func @transform_3(%arg0: i32) -> (i32, i32) {
    %c0_i32 = arith.constant 0 : i32
    %c0_i32_0 = arith.constant 0 : i32
    %c0_i32_1 = arith.constant 0 : i32
    return %c0_i32, %c0_i32_0 : i32, i32
  }
  func.func @transform_4(%arg0: i32) -> i32 {
    %c0_i32 = arith.constant 0 : i32
    %c0_i32_0 = arith.constant 0 : i32
    return %c0_i32 : i32
  }
  func.func @transform_5(%arg0: i32) -> (i32, i32) {
    %c0_i32 = arith.constant 0 : i32
    %c0_i32_0 = arith.constant 0 : i32
    return %arg0, %c0_i32 : i32, i32
  }
}

</mosaic_0001>

<bundles_post_ra>
// kernel: critic_forward.1
= control target key start
LH: loop header
LB: loop body
LE: loop exit
PB: predicated region body
PF: predicated region fallthrough
CT: control target
= control target key end

     0   :  { %vm81_vm0 = vcmask 261120   ;;  %vm163_vm1 = vcmask 7168   ;;  %s306_s1 = inlined_call_operand.vmem [shape: bf16[32,512], index: 1, kind: input, shape index: {}]   ;;  %s307_s0 = inlined_call_operand.vmem [shape: bf16[8,32], index: 0, kind: input, shape index: {}]   ;;  %s308_s2 = inlined_call_operand.vmem [shape: f32[1,512], index: 2, kind: input, shape index: {}]   ;;  %s309_s3 = inlined_call_operand.vmem [shape: f32[1,512], index: 3, kind: input, shape index: {}]   ;;  %s310_s4 = inlined_call_operand.<no memory space> [shape: f32[1], index: 4, kind: input, shape index: {}]   ;;  %s311_s5 = inlined_call_operand.vmem [shape: f32[8,1], index: 5, kind: output, shape index: {}]  }
   0x1   :  { %v187_v0 = vld [vmem:[%s306_s1 + $0x20] sm:$0xf]  ;;  %v211_v1 = vld [vmem:[%s306_s1 + $0x2c] sm:$0xf0]  ;;  %v209_v2 = vld [vmem:[%s306_s1 + $0x24] sm:$0xf]  ;;  %v161_v58 = vstv %s310_s4 }
   0x2   :  { %v188_v3 = vor.u32 %v211_v1, %v187_v0  ;;  %v189_v4 = vld [vmem:[%s306_s1 + $0x30] sm:$0xf0]  ;;  %v195_v5 = vld [vmem:[%s306_s1 + $0x28] sm:$0xf]  ;;  %v212_v6 = vld [vmem:[%s306_s1 + $0x34] sm:$0xf0] }
   0x3   :  { %v192_v7 = vor.u32 %v209_v2, %v189_v4  ;;  %v196_v8 = vor.u32 %v212_v6, %v195_v5  ;;  %v210_v9 = vld [vmem:[%s306_s1 + $0x2c] sm:$0xf]  ;;  %v197_v10 = vld [vmem:[%s306_s1 + $0x38] sm:$0xf0]  ;;  %v171_v11 = vld [vmem:[%s306_s1] sm:$0xf] }
   0x4   :  { %91 = vmatpush.bf16.msra.mxu0 %v188_v3  ;;  %v200_v12 = vor.u32 %v210_v9, %v197_v10  ;;  %v207_v13 = vld [vmem:[%s306_s1 + $0xc] sm:$0xf0]  ;;  %v205_v14 = vld [vmem:[%s306_s1 + $0x4] sm:$0xf]  ;;  %v173_v15 = vld [vmem:[%s306_s1 + $0x10] sm:$0xf0] }
   0x5   :  { %104 = vmatpush.bf16.msra.mxu1 %v192_v7  ;;  %117 = vmatpush.bf16.msra.mxu2 %v196_v8  ;;  %v172_v16 = vor.u32 %v207_v13, %v171_v11  ;;  %v176_v17 = vor.u32 %v205_v14, %v173_v15  ;;  %v179_v18 = vld [vmem:[%s306_s1 + $0x8] sm:$0xf]  ;;  %v208_v19 = vld [vmem:[%s306_s1 + $0x14] sm:$0xf0]  ;;  %v206_v20 = vld [vmem:[%s306_s1 + $0xc] sm:$0xf] }
   0x6   :  { %130 = vmatpush.bf16.msra.mxu3 %v200_v12  ;;  %v180_v21 = vor.u32 %v208_v19, %v179_v18  ;;  %v181_v22 = vld [vmem:[%s306_s1 + $0x18] sm:$0xf0]  ;;  %v22_v24 = vld [vmem:[%s307_s0] sm:$0xf] }
   0x7   :  { %v184_v23 = vor.u32 %v206_v20, %v181_v22  ;;  %v31_v25 = vld [vmem:[%s308_s2] sm:$0xf] }
   0x8   :  { %92 = vmatpush.bf16.msra.mxu0 %v172_v16  ;;  %v33_v26 = vperm.slane %v31_v25, 0  ;;  %v34_v27 = vperm.slane %v31_v25, 1  ;;  %v141_v28 = vld [vmem:[%s309_s3] sm:$0xf]  ;;  %v35_v37 = vperm.slane %v31_v25, 2  ;;  %v36_v38 = vperm.slane %v31_v25, 3 }
   0x9   :  { %105 = vmatpush.bf16.msra.mxu1 %v176_v17  ;;  %118 = vmatpush.bf16.msra.mxu2 %v180_v21  ;;  %v143_v32 = vperm.slane %v141_v28, 0  ;;  %v144_v34 = vperm.slane %v141_v28, 1  ;;  %v145_v43 = vperm.slane %v141_v28, 2  ;;  %v146_v48 = vperm.slane %v141_v28, 3 }
   0xa   :  { %131 = vmatpush.bf16.msra.mxu3 %v184_v23 }
   0xb   :  { %201 = vmatmul.msk.bf16.vlgmr.msra.gmra.mxu0 %vm81_vm0, %v22_v24 }
   0xc   :  { %202 = vmatmul.msk.bf16.vlgmr.msra.gmra.mxu1 %vm81_vm0, %v22_v24  ;;  %203 = vmatmul.msk.bf16.vlgmr.msra.gmra.mxu2 %vm81_vm0, %v22_v24 }
   0xd   :  { %204 = vmatmul.msk.bf16.vlgmr.msra.gmra.mxu3 %vm81_vm0, %v22_v24 }
  0x88   :  { %v94_v29 = vpop.f32.mrf.mxu0 }
  0x89   :  { %v95_v30 = vadd.f32 %v94_v29, %v33_v26  ;;  %v107_v31 = vpop.f32.mrf.mxu1 }
  0x8a   :  { %v108_v33 = vadd.f32 %v107_v31, %v34_v27 }
  0x8b   :  { %v137_v35 = vmax.f32 %v95_v30, 0.0 }
  0x8c   :  { %v138_v36 = vmax.f32 %v108_v33, 0.0 }
  0x8d   :  { %v151_v39 = vmul.f32 %v143_v32, %v137_v35 }
  0x8e   :  { %v152_v40 = vmul.f32 %v144_v34, %v138_v36 }
  0x8f   :  { %v120_v41 = vpop.f32.mrf.mxu2 }
  0x90   :  { %v121_v42 = vadd.f32 %v120_v41, %v35_v37  ;;  %v133_v44 = vpop.f32.mrf.mxu3  ;;  %v96_v45 = vpop.f32.mrf.mxu0  ;;  %v155_v50 = vadd.f32 %v152_v40, %v151_v39 }
  0x91   :  { %v134_v46 = vadd.f32 %v133_v44, %v36_v38  ;;  %v109_v47 = vpop.f32.mrf.mxu1 }
  0x92   :  { %v139_v49 = vmax.f32 %v121_v42, 0.0 }
  0x93   :  { %v140_v51 = vmax.f32 %v134_v46, 0.0 }
  0x94   :  { %v153_v52 = vmul.f32 %v145_v43, %v139_v49 }
  0x95   :  { %v154_v53 = vmul.f32 %v146_v48, %v140_v51 }
  0x96   :  { %v156_v54 = vadd.f32 %v155_v50, %v153_v52 }
  0x97   :  { %v122_v55 = vpop.f32.mrf.mxu2 }
  0x98   :  { %v135_v56 = vpop.f32.mrf.mxu3  ;;  %v157_v57 = vadd.f32 %v156_v54, %v154_v53 }
  0x9a   :  { %158 = vadd.xlane.f32.xlu0 %v157_v57 }
 0x10d   :  { %v159_v59 = vpop.xlane.xlu0 %158 }
 0x10e   :  { %v162_v60 = vadd.f32 %v161_v58, %v159_v59 }
 0x110   :  { %164 = vst.msk [vmem:[%s311_s5] sm:$0xff] %vm163_vm1, %v162_v60 }

</bundles_post_ra>
